<compile_context>
chip_gen: v5e
topology: v5e:2x2
jax: 0.10.0
libtpu: 0.0.40
codegen_flags: <defaults>
</compile_context>

<pallas_src>
import math
import jax
import jax.numpy as jnp
from jax.experimental import pallas as pl
from jax.experimental.pallas import tpu as pltpu


def token_embedding_kernel(x_ref, w_ref, b_ref, o_ref):
    x = x_ref[0]                      # (TL, 3C)  current sequence tile
    acc = jnp.dot(x, w_ref[...], preferred_element_type=jnp.float32)
    acc = acc + b_ref[...]            # (1, D) broadcasts over TL rows
    o_ref[0] = acc.astype(o_ref.dtype)


def token_embedding(x, weight, bias, *, tile_l=None):
    """x: (B, L, c_in); weight: (d_model, c_in, 3) (PyTorch Conv1d layout);
    bias: (d_model,).  Returns (B, L, d_model) — same layout the PyTorch
    module returns."""
    B, L, C = x.shape
    D = weight.shape[0]

    # --- wrapper-side glue (tiny tensors, handled by XLA) -------------------
    # Circular shifts done once on the (B, L, C) input => tiling L inside the
    # kernel needs no halo handling.
    x_cat = jnp.concatenate(
        [jnp.roll(x, 1, axis=1), x, jnp.roll(x, -1, axis=1)], axis=-1
    )                                                   # (B, L, 3C)
    # Fold the 3 taps into one GEMM operand: rows [kC:(k+1)C] = weight[:,:,k].T
    w_cat = jnp.transpose(weight, (2, 1, 0)).reshape(3 * C, D)   # (3C, D)
    bias2d = bias.reshape(1, D)

    # --- tiling -------------------------------------------------------------
    if tile_l is None:
        tile_l = L if L <= 512 else 512     # multiple of 8 (or full L)
    num_l_tiles = pl.cdiv(L, tile_l)

    return pl.pallas_call(
        token_embedding_kernel,
        out_shape=jax.ShapeDtypeStruct((B, L, D), x.dtype),
        grid=(B, num_l_tiles),
        in_specs=[
            pl.BlockSpec((1, tile_l, 3 * C), lambda b, l: (b, l, 0)),
            # Weight / bias: constant block index -> resident across the grid.
            pl.BlockSpec((3 * C, D), lambda b, l: (0, 0)),
            pl.BlockSpec((1, D), lambda b, l: (0, 0)),
        ],
        out_specs=pl.BlockSpec((1, tile_l, D), lambda b, l: (b, l, 0)),
        compiler_params=pltpu.CompilerParams(
            dimension_semantics=("parallel", "parallel")),
    )(x_cat, w_cat, bias2d)


def ref_forward(x, weight, bias):
    """Pure-JAX reference matching the PyTorch module exactly."""
    x_ncl = jnp.transpose(x, (0, 2, 1))                       # (B, C, L)
    x_pad = jnp.concatenate(
        [x_ncl[:, :, -1:], x_ncl, x_ncl[:, :, :1]], axis=-1)  # circular pad=1
    y = jax.lax.conv_general_dilated(
        x_pad, weight, window_strides=(1,), padding="VALID",
        dimension_numbers=("NCH", "OIH", "NCH"))
    y = y + bias[None, :, None]
    return jnp.transpose(y, (0, 2, 1))                        # (B, L, D)


def _make_params(key, c_in, d_model):
    """Deterministic init mirroring the module: kaiming_normal_ (fan_in,
    leaky_relu) for the weight, default Conv1d uniform init for the bias."""
    kw, kb = jax.random.split(key)
    fan_in = c_in * 3
    gain = math.sqrt(2.0 / (1.0 + 0.01 ** 2))
    std = gain / math.sqrt(fan_in)
    weight = std * jax.random.normal(kw, (d_model, c_in, 3), dtype=jnp.float32)
    bound = 1.0 / math.sqrt(fan_in)
    bias = jax.random.uniform(kb, (d_model,), minval=-bound, maxval=bound,
                              dtype=jnp.float32)
    return weight, bias


if __name__ == "__main__":
    key = jax.random.PRNGKey(0)
    k1, k2, k3, k4 = jax.random.split(key, 4)

    # --- small config matching the module's toy shapes ----------------------
    c_in, d_model, B, L = 4, 32, 2, 8
    weight, bias = _make_params(k1, c_in, d_model)
    x = jax.random.normal(k2, (B, L, c_in), dtype=jnp.float32)

    out = jax.block_until_ready(token_embedding(x, weight, bias))
    ref = ref_forward(x, weight, bias)
    assert out.shape == (B, L, d_model)
    assert jnp.allclose(out, ref, atol=1e-5, rtol=1e-5)

    # --- second config exercising the L-tiled (multi-tile) path -------------
    c_in2, d_model2, B2, L2 = 7, 128, 1, 1024
    weight2, bias2 = _make_params(k3, c_in2, d_model2)
    x2 = jax.random.normal(k4, (B2, L2, c_in2), dtype=jnp.float32)

    out2 = jax.block_until_ready(token_embedding(x2, weight2, bias2))
    ref2 = ref_forward(x2, weight2, bias2)
    assert out2.shape == (B2, L2, d_model2)
    assert jnp.allclose(out2, ref2, atol=1e-4, rtol=1e-4)

    print("KERNEL_OK")
</pallas_src>

<mosaic_0001>
module attributes {stable_mosaic.version = 11 : i64} {
  func.func @token_embedding_kernel(%arg0: i32, %arg1: i32, %arg2: memref<1x8x12xf32, #tpu.memory_space<vmem>>, %arg3: memref<12x32xf32, #tpu.memory_space<vmem>>, %arg4: memref<1x32xf32, #tpu.memory_space<vmem>>, %arg5: memref<1x8x32xf32, #tpu.memory_space<vmem>>) attributes {dimension_semantics = [#tpu.dimension_semantics<parallel>, #tpu.dimension_semantics<parallel>], iteration_bounds = array<i64: 2, 1>, scalar_prefetch = 0 : i64, scratch_operands = 0 : i64, tpu.core_type = #tpu.core_type<tc>, window_params = [{transform_indices = @transform_0, window_bounds = array<i64: 1, 8, 12>}, {pipeline_mode = #tpu.pipeline_mode<synchronous>, transform_indices = @transform_1, window_bounds = array<i64: 12, 32>}, {pipeline_mode = #tpu.pipeline_mode<synchronous>, transform_indices = @transform_2, window_bounds = array<i64: 1, 32>}, {transform_indices = @transform_3, window_bounds = array<i64: 1, 8, 32>}]} {
    %c0 = arith.constant 0 : index
    %c0_0 = arith.constant 0 : index
    %c0_1 = arith.constant 0 : index
    %0 = vector.load %arg2[%c0, %c0_0, %c0_1] : memref<1x8x12xf32, #tpu.memory_space<vmem>>, vector<1x8x12xf32>
    %1 = vector.shape_cast %0 : vector<1x8x12xf32> to vector<8x12xf32>
    %c0_2 = arith.constant 0 : index
    %c0_3 = arith.constant 0 : index
    %2 = vector.load %arg3[%c0_2, %c0_3] : memref<12x32xf32, #tpu.memory_space<vmem>>, vector<12x32xf32>
    %cst = arith.constant dense<0.000000e+00> : vector<8x32xf32>
    %3 = tpu.matmul %1, %2, %cst {dimension_numbers = #tpu.dot_dimension_numbers<[1], [0], [0], [1], [0, 0, 1, 1], [], []>} : vector<8x12xf32>, vector<12x32xf32>, vector<8x32xf32> -> vector<8x32xf32>
    %c0_4 = arith.constant 0 : index
    %c0_5 = arith.constant 0 : index
    %4 = vector.load %arg4[%c0_4, %c0_5] : memref<1x32xf32, #tpu.memory_space<vmem>>, vector<1x32xf32>
    %5 = vector.broadcast %4 : vector<1x32xf32> to vector<8x32xf32>
    %6 = arith.addf %3, %5 : vector<8x32xf32>
    %c0_6 = arith.constant 0 : index
    %c0_7 = arith.constant 0 : index
    %c0_8 = arith.constant 0 : index
    %7 = vector.load %arg5[%c0_6, %c0_7, %c0_8] : memref<1x8x32xf32, #tpu.memory_space<vmem>>, vector<1x8x32xf32>
    %8 = vector.shape_cast %7 : vector<1x8x32xf32> to vector<8x32xf32>
    %9 = vector.shape_cast %6 : vector<8x32xf32> to vector<1x8x32xf32>
    tpu.vector_store %arg5[%c0_6, %c0_7, %c0_8], %9 {strides = array<i32>} : memref<1x8x32xf32, #tpu.memory_space<vmem>>, vector<1x8x32xf32>,
    return
  }
  func.func @transform_0(%arg0: i32, %arg1: i32) -> (i32, i32, i32) {
    %c0_i32 = arith.constant 0 : i32
    %c0_i32_0 = arith.constant 0 : i32
    return %arg0, %arg1, %c0_i32 : i32, i32, i32
  }
  func.func @transform_1(%arg0: i32, %arg1: i32) -> (i32, i32) {
    %c0_i32 = arith.constant 0 : i32
    %c0_i32_0 = arith.constant 0 : i32
    %c0_i32_1 = arith.constant 0 : i32
    return %c0_i32, %c0_i32_0 : i32, i32
  }
  func.func @transform_2(%arg0: i32, %arg1: i32) -> (i32, i32) {
    %c0_i32 = arith.constant 0 : i32
    %c0_i32_0 = arith.constant 0 : i32
    %c0_i32_1 = arith.constant 0 : i32
    return %c0_i32, %c0_i32_0 : i32, i32
  }
  func.func @transform_3(%arg0: i32, %arg1: i32) -> (i32, i32, i32) {
    %c0_i32 = arith.constant 0 : i32
    %c0_i32_0 = arith.constant 0 : i32
    return %arg0, %arg1, %c0_i32 : i32, i32, i32
  }
}

</mosaic_0001>

<bundles_post_ra>
// kernel: tpu_custom_call.1
= control target key start
LH: loop header
LB: loop body
LE: loop exit
PB: predicated region body
PF: predicated region fallthrough
CT: control target
= control target key end

     0   :  { %8 = vsyncpa [#allocation3], 0  ;;  %s776_s0 = inlined_call_operand.hbm [shape: f32[2,8,12], index: 0, kind: input, shape index: {}]   ;;  %s777_s1 = inlined_call_operand.hbm [shape: f32[12,32], index: 1, kind: input, shape index: {}]   ;;  %s778_s2 = inlined_call_operand.vmem [shape: f32[1,32], index: 2, kind: input, shape index: {}]   ;;  %s779_s3 = inlined_call_operand.hbm [shape: f32[2,8,32], index: 3, kind: output, shape index: {}]  }
   0x1   :  { %10 = vsyncpa [#allocation3 + $0x1], 0 }
   0x2   :  { %11 = vsyncpa [#allocation6], 0 }
   0x3   :  { %12 = vsyncpa [#allocation4], 0 }
   0x4   :  { %14 = vsyncpa [#allocation4 + $0x1], 0  ;;  %s630_s12 = smov 0   ;;  %s632_s13 = smov 0  }
   0x5   :  { %s634_s14 = smov 0   ;;  %s636_s15 = smov 0  }
   0x6   :  { %s638_s16 = smov 0   ;;  %s640_s17 = smov 0  }
   0x7 LB: > { %s366_s18 = sadd.s32 4294967295, %s605_s17   ;;  %p368_p0 = scmp.ge.s32.totalorder %s605_s17, 1  ;;  %s605_s17 = sphi %s640_s17, %s20_s17   ;;  %s601_s16 = sphi %s638_s16, %s790_s16   ;;  %s597_s15 = sphi %s636_s15, %s789_s15   ;;  %s593_s14 = sphi %s634_s14, %s788_s14   ;;  %s589_s13 = sphi %s632_s13, %s787_s13   ;;  %s585_s12 = sphi %s630_s12, %s786_s12  }
   0x8   : > { %p662_p1 = scmp.eq.s32.totalorder %s366_s18, 0  ;;  %p135_p2 = scmp.lt.s32.totalorder %s605_s17, 3 }
   0x9   : > { %s146_s22 = sshll.u32 %s777_s1, 4  ;;  %s607_s24 = smov [#allocation5]   ;;  %s147_s22 = int_to_ptr.hbm [resolvable:$true] %s146_s22 }
   0xa   : > { %p670_p3 = pnand %p368_p0, %p135_p2  ;;  %s148_s25 = sshll.u32 %s607_s24, 4  ;;  %s149_s25 = int_to_ptr.vmem [resolvable:$true] %s148_s25 }
   0xb   : > { %p370_p6 = scmp.ge.s32.totalorder %s605_s17, 2  ;;  %s608_s26 = smov 128  }
   0xc   : > { %p391_p4 = pneg %p670_p3  ;;  %s609_s27 = smov 8  }
   0xd   : > { %s367_s28 = sadd.s32 4294967294, %s605_s17   ;;  %s32_s29 = sadd.s32 1, %s601_s16 }
   0xe   : > { %p392_p5 = pnand %p391_p4, %p662_p1  ;;  %s41_s30 = sadd.s32 1, %s593_s14 }
   0xf   : > { %p34_p7 = scmp.ge.s32.totalorder %s32_s29, 2  ;;  %p48_p8 = scmp.ne.s32.totalorder %s593_s14, %s589_s13 }
  0x10   : > { %394 = dma.hbm_to_vmem [thread:$0]  (!%p392_p5), %s147_s22, 256, %s149_s25, [#allocation6], %s608_s26, %s608_s26, %s609_s27  }
  0x11   : > { %p49_p9 = scmp.eq.s32.totalorder %s605_s17, 0  ;;  %p54_p10 = scmp.ne.s32.totalorder %s589_s13, %s585_s12 }
  0x12   : > { %s792_s29 = smov (%p34_p7, %s32_s29), 0  ;;  %p122_p13 = scmp.eq.s32.totalorder %s366_s18, 1 }
  0x13   : > { %p689_p11 = por %p49_p9, %p48_p8  ;;  %p695_p12 = por %p662_p1, %p54_p10 }
  0x14   : > { %s36_s6 = ssub.s32 %s601_s16, %s792_s29  ;;  %p128_p2 = scmp.eq.s32.totalorder %s367_s28, 1 }
  0x15   : > { %p39_p0 = scmp.eq.s32.totalorder %s36_s6, 0  ;;  %p701_p4 = por %p122_p13, %p48_p8 }
  0x16   : > { %p404_p5 = scmp.lt.s32.totalorder %s605_s17, 2  ;;  %p709_p7 = por %p128_p2, %p54_p10 }
  0x17   : > { %s707_s8 = scalar_select %p39_p0, %s593_s14, %s41_s30  }
  0x18   : > { %s165_s10 = sand.u32 1, %s593_s14   ;;  %s372_s20 = sshll.u32 %s601_s16, 3 }
  0x19   : > { %s371_s11 = sshll.u32 %s165_s10, 3  ;;  %s174_s18 = scalar_lea.hbm %s776_s0, %s372_s20 }
  0x1a   : > { %s169_s24 = scalar_lea.vmem [#allocation2], %s371_s11  ;;  %s176_s26 = sshll.u32 %s174_s18, 4  ;;  %s177_s26 = int_to_ptr.hbm [resolvable:$true] %s176_s26 }
  0x1b   : > { %s178_s25 = sshll.u32 %s169_s24, 4  ;;  %p396_p8 = pnand %p404_p5, %p689_p11  ;;  %s179_s25 = int_to_ptr.vmem [resolvable:$true] %s178_s25 }
  0x1c   : > { %s166_s27 = scalar_lea.sflag [#allocation3], %s165_s10  ;;  %187 = sbr.rel (%p670_p3) target bundleno = 171 (0xab), region = 32 }
  0x1d   : > { %398 = dma.hbm_to_vmem [thread:$0]  (!%p396_p8), %s177_s26, 128, %s179_s25, %s166_s27  }
  0x1e   : > { %s723_s28 = sand.u32 (!%p670_p3), 1, %s589_s13  }
  0x1f   : > { %s374_s30 = sshll.u32 (!%p670_p3), %s723_s28, 3  ;;  %s190_s6 = scalar_lea.sflag (!%p670_p3), [#allocation3], %s723_s28 }
  0x20   : > { %s193_s11 = scalar_lea.vmem (!%p670_p3), [#allocation2], %s374_s30 }
  0x21   : > { %572 = dma.done.wait (%p695_p12), %s190_s6, 128  }
  0x22   : > { %574 = vsyncadd (%p695_p12), %s190_s6, 4294967168 }
  0x23   : > { %576 = dma.done.wait (%p662_p1), [#allocation6], 256  }
  0x24   : > { %578 = vsyncadd (%p662_p1), [#allocation6], 4294967040  ;;  %vm233_vm0 = vcmask 1043456   ;;  %v224_v0 = vld [vmem:[#allocation5 + $0x8] sm:$0xf]  ;;  %v223_v1 = vld [vmem:[#allocation5] sm:$0xff] }
  0x25   : > { %377 = vmatpush.msk.msra.mxu0 %vm233_vm0, %v224_v0  ;;  %v222_v2 = vld [vmem:[%s193_s11] sm:$0xff]  ;;  %vm229_vm1 = vcmask 97280   ;;  %s380_s23 = sshll.u32 %s597_s15, 3  ;;  %s221_s19 = scalar_lea.vmem [#allocation7], %s374_s30  ;;  %vm257_vm2 = vcmask 261120  }
  0x26   : > { %s271_s10 = scalar_lea.hbm %s779_s3, %s380_s23  ;;  %v458_v3 = vld [vmem:[%s778_s2] ss:$0 sm:$0xff]  ;;  %s273_s22 = sshll.u32 %s221_s19, 4  ;;  %s274_s22 = int_to_ptr.vmem [resolvable:$true] %s273_s22 }
  0x27   : > { %252 = vmatpush.msra.mxu0 %v223_v1  ;;  %s275_s18 = sshll.u32 %s271_s10, 4  ;;  %s260_s24 = scalar_lea.sflag [#allocation4], %s723_s28  ;;  %s276_s18 = int_to_ptr.hbm [resolvable:$true] %s275_s18 }
  0x28   : > { %378 = vmatmul.msk.f32.vlgmr.msra.gmra.mxu0 %vm229_vm1, %v222_v2  ;;  %s533_s15 = sshra.s32 %s276_s18, 4  ;;  %s539_s30 = scalar_lea.hbm %s779_s3, 16  ;;  %s534_s15 = int_to_ptr.hbm [resolvable:$true] %s533_s15 }
  0x29   : > { %s535_s25 = scalar_lea.hbm %s534_s15, 8  ;;  %p540_p10 = scmp.lt.s32.totalorder %s534_s15, %s779_s3 }
  0x2a   : > { %p536_p1 = scmp.ne.s32.totalorder %s534_s15, %s535_s25  ;;  %p541_p11 = scmp.lt.s32.totalorder %s539_s30, %s535_s25 }
  0x2c   : > { %p537_p3 = pnand %p536_p1, %p701_p4  ;;  %p542_p12 = por %p541_p11, %p540_p10 }
  0x2e   : > { %p538_p9 = pneg %p537_p3 }
  0x30   : > { %p543_p13 = pnand %p542_p12, %p538_p9 }
  0xa5   : > { %v254_v4 = vpop.f32.mrf.mxu0 }
  0xa6   : > { %v255_v5 = vadd.f32 %v458_v3, %v254_v4 }
  0xa8   : > { %258 = vst.msk [vmem:[%s221_s19] sm:$0xff] %vm257_vm2, %v255_v5 }
  0xa9   : > { %546 = shalt.err (!%p543_p13)
}
  0xaa   : > { %389 = dma.vmem_to_hbm [thread:$0]  (%p701_p4), %s274_s22, 128, %s276_s18, %s260_s24  }
  0xab PF: > { %s287_s28 = sand.u32 1, %s585_s12   ;;  %p400_p0 = pnand %p370_p6, %p709_p7 }
  0xac   : > { %s288_s23 = scalar_lea.sflag [#allocation4], %s287_s28 }
  0xad   : > { %p401_p2 = pneg %p400_p0 }
  0xaf   : > { %580 = dma.done.wait (%p401_p2), %s288_s23, 128  }
  0xb0   : > { %582 = vsyncadd (%p401_p2), %s288_s23, 4294967168  ;;  %s20_s17 = sadd.s32 1, %s605_s17   ;;  %s786_s12 = smov %s589_s13 }
  0xb1   : > { %p17_p5 = scmp.ge.s32.totalorder %s20_s17, 4   ;;  %s787_s13 = smov %s593_s14 }
  0xb2   : > { %s788_s14 = smov %s707_s8  ;;  %s789_s15 = smov %s601_s16 }
  0xb3   : > { %s790_s16 = smov %s792_s29  ;;  %19 = sbr.rel (!%p17_p5) target bundleno = 7 (0x7), region = 81 }
  0xb8   :  { %294 = vsyncpa [#allocation3], 1 }
  0xb9   :  { %296 = vsyncpa [#allocation3 + $0x1], 1 }
  0xba   :  { %297 = vsyncpa [#allocation6], 1 }
  0xbb   :  { %298 = vsyncpa [#allocation4], 1 }
  0xbc   :  { %300 = vsyncpa [#allocation4 + $0x1], 1 }

</bundles_post_ra>
